<compile_context>
chip_gen: v7x
topology: tpu7x:2x2x1
jax: 0.10.0
libtpu: 0.0.40
codegen_flags: <defaults>
</compile_context>

<pallas_src>
import functools

import jax
import jax.numpy as jnp
from jax import lax
from jax.experimental import pallas as pl
from jax.experimental.pallas import tpu as pltpu

_LANE = 128  # vreg lane width; flattened layout is (rows, 128), lane-dense.


def _focal_elementwise(x, t, alpha, gamma, logits):
    """Elementwise focal loss on f32 tiles (VPU + EUP only, no MXU)."""
    if logits:
        relu_x = jnp.maximum(x, 0.0)
        e = jnp.exp(-jnp.abs(x))                       # shared transcendental
        bce = relu_x - x * t + jnp.log1p(e)
        # pt = exp(-bce) = exp(x*t - relu(x)) / (1 + e); the second exp does
        # not depend on log1p, so the EUP dependency chain is shorter.
        pt = jnp.exp(x * t - relu_x) / (1.0 + e)
    else:
        # F.binary_cross_entropy on probabilities; PyTorch clamps logs at -100.
        log_p = jnp.maximum(jnp.log(x), -100.0)
        log_q = jnp.maximum(jnp.log1p(-x), -100.0)
        bce = -(t * log_p + (1.0 - t) * log_q)
        pt = jnp.exp(-bce)
    one_m_pt = 1.0 - pt
    if isinstance(gamma, int) and 0 <= gamma <= 4:     # no pow -> log+exp
        if gamma == 0:
            focal = jnp.ones_like(bce)
        else:
            focal = one_m_pt
            for _ in range(gamma - 1):
                focal = focal * one_m_pt
    else:
        # Rounding can make (1 - pt) slightly negative when bce ~ 0; a
        # negative base with fractional gamma would give NaN -> clamp.
        focal = jnp.maximum(one_m_pt, 0.0) ** gamma
    return alpha * focal * bce


def _focal_reduce_kernel(x_ref, t_ref, out_ref, *, alpha, gamma, logits,
                         blocks_per_group, block_rows, n_valid, need_mask):
    """Grid (groups, row_blocks). out_ref is a resident (8, 128) f32 partial-sum
    block per group; the cross-lane reduce is deferred to the wrapper."""
    @pl.when(pl.program_id(1) == 0)
    def _init():
        out_ref[...] = jnp.zeros_like(out_ref)

    x = x_ref[...].astype(jnp.float32)
    t = t_ref[...].astype(jnp.float32)
    fl = _focal_elementwise(x, t, alpha, gamma, logits)

    if need_mask:
        # Mask lane padding and rows past the true element count (covers both
        # the ragged last row-block and the padded tail).
        blk = pl.program_id(0) * blocks_per_group + pl.program_id(1)
        row_ids = blk * block_rows + lax.broadcasted_iota(jnp.int32, fl.shape, 0)
        lane_ids = lax.broadcasted_iota(jnp.int32, fl.shape, 1)
        fl = jnp.where(row_ids * _LANE + lane_ids < n_valid, fl, 0.0)

    # Fold sublane groups only (pure VPU vreg adds); no per-tile XLU reduce.
    out_ref[...] += fl.reshape(block_rows // 8, 8, _LANE).sum(axis=0)


def _focal_elemwise_kernel(x_ref, t_ref, out_ref, *, alpha, gamma, logits):
    x = x_ref[...].astype(jnp.float32)
    t = t_ref[...].astype(jnp.float32)
    out_ref[...] = _focal_elementwise(x, t, alpha, gamma, logits).astype(
        out_ref.dtype)


def _pick_block_rows(rows, itemsize, block_bytes):
    """Largest multiple-of-8 row count whose (rows, 128) tile fits block_bytes."""
    tb = max(8, (block_bytes // (_LANE * itemsize)) // 8 * 8)
    return min(tb, rows)


@functools.partial(
    jax.jit,
    static_argnames=("alpha", "gamma", "logits", "reduction", "block_bytes"))
def focal_loss(inputs, targets, alpha=1.0, gamma=2, logits=True,
               reduction="mean", block_bytes=2 << 20):
    """Pallas TPU focal loss. inputs/targets: same-shape arrays; streamed at
    their native dtype and cast to f32 inside the kernel."""
    orig_shape = inputs.shape
    n = int(inputs.size)
    out_dtype = (inputs.dtype if jnp.issubdtype(inputs.dtype, jnp.floating)
                 else jnp.float32)

    # Lane-dense flattening: (rows, 128) with rows a multiple of 8. Only a
    # ragged tail pays a small pad; typical sizes reshape for free.
    xf = inputs.reshape(-1)
    tf = targets.reshape(-1)
    rows = ((pl.cdiv(n, _LANE) + 7) // 8) * 8
    padded = rows * _LANE
    if padded != n:
        xf = jnp.pad(xf, (0, padded - n))
        tf = jnp.pad(tf, (0, padded - n))
    x2 = xf.reshape(rows, _LANE)
    t2 = tf.reshape(rows, _LANE)

    itemsize = max(jnp.dtype(x2.dtype).itemsize, jnp.dtype(t2.dtype).itemsize)
    tb = _pick_block_rows(rows, itemsize, block_bytes)
    n_blocks = pl.cdiv(rows, tb)

    if reduction in ("mean", "sum"):
        # Two row-groups when the block count splits evenly -> both v7x
        # TensorCores via the leading "parallel" axis; otherwise one group.
        ng = 2 if (n_blocks >= 2 and n_blocks % 2 == 0) else 1
        bpg = n_blocks // ng
        need_mask = (n_blocks * tb * _LANE) != n
        kernel = functools.partial(
            _focal_reduce_kernel, alpha=float(alpha), gamma=gamma,
            logits=bool(logits), blocks_per_group=bpg, block_rows=tb,
            n_valid=n, need_mask=need_mask)
        partials = pl.pallas_call(
            kernel,
            out_shape=jax.ShapeDtypeStruct((8 * ng, _LANE), jnp.float32),
            grid=(ng, bpg),
            in_specs=[
                pl.BlockSpec((tb, _LANE), lambda g, i: (g * bpg + i, 0)),
                pl.BlockSpec((tb, _LANE), lambda g, i: (g * bpg + i, 0)),
            ],
            out_specs=pl.BlockSpec((8, _LANE), lambda g, i: (g, 0)),
            compiler_params=pltpu.CompilerParams(
                dimension_semantics=("parallel", "arbitrary")),
        )(x2, t2)
        total = jnp.sum(partials)        # tiny (8*ng, 128) reduce in XLA
        if reduction == "mean":
            total = total * (1.0 / float(n))
        return total

    # reduction == 'none': per-element loss, written back in the input dtype.
    kernel = functools.partial(
        _focal_elemwise_kernel, alpha=float(alpha), gamma=gamma,
        logits=bool(logits))
    out2 = pl.pallas_call(
        kernel,
        out_shape=jax.ShapeDtypeStruct((rows, _LANE), out_dtype),
        grid=(n_blocks,),
        in_specs=[pl.BlockSpec((tb, _LANE), lambda i: (i, 0)),
                  pl.BlockSpec((tb, _LANE), lambda i: (i, 0))],
        out_specs=pl.BlockSpec((tb, _LANE), lambda i: (i, 0)),
        compiler_params=pltpu.CompilerParams(
            dimension_semantics=("parallel",)),
    )(x2, t2)
    out_flat = out2.reshape(-1)
    if padded != n:
        out_flat = out_flat[:n]
    return out_flat.reshape(orig_shape)


def reference(inputs, targets, alpha=1.0, gamma=2, logits=True,
              reduction="mean"):
    x = inputs.astype(jnp.float32)
    t = targets.astype(jnp.float32)
    if logits:
        bce = jnp.maximum(x, 0.0) - x * t + jnp.log1p(jnp.exp(-jnp.abs(x)))
    else:
        bce = -(t * jnp.maximum(jnp.log(x), -100.0)
                + (1.0 - t) * jnp.maximum(jnp.log1p(-x), -100.0))
    pt = jnp.exp(-bce)
    fl = alpha * (1.0 - pt) ** gamma * bce
    if reduction == "mean":
        return jnp.mean(fl)
    if reduction == "sum":
        return jnp.sum(fl)
    return fl


if __name__ == "__main__":
    key = jax.random.PRNGKey(0)
    k1, k2, k3, k4 = jax.random.split(key, 4)

    # Multi-label classifier head: batch=8, num_labels=128.
    B, C = 8, 128
    x = jax.random.normal(k1, (B, C), dtype=jnp.float32) * 2.0
    t = jax.random.bernoulli(k2, 0.3, (B, C)).astype(jnp.float32)

    # Default module config: alpha=1, gamma=2, logits=True, reduction='mean'.
    out_mean = jax.block_until_ready(focal_loss(x, t))
    ref_mean = reference(x, t)
    assert out_mean.shape == ()
    assert jnp.allclose(out_mean, ref_mean, atol=1e-5, rtol=1e-5), (
        f"mean mismatch: {out_mean} vs {ref_mean}")

    out_sum = jax.block_until_ready(focal_loss(x, t, reduction="sum"))
    ref_sum = reference(x, t, reduction="sum")
    assert jnp.allclose(out_sum, ref_sum, atol=1e-3, rtol=1e-5), (
        f"sum mismatch: {out_sum} vs {ref_sum}")

    out_none = jax.block_until_ready(focal_loss(x, t, reduction="none"))
    ref_none = reference(x, t, reduction="none")
    assert out_none.shape == (B, C) and out_none.dtype == x.dtype
    assert jnp.allclose(out_none, ref_none, atol=1e-5, rtol=1e-5)

    # Ragged shape -> exercises lane padding + in-kernel masking.
    xr = jax.random.normal(k3, (2, 3, 7), dtype=jnp.float32)
    tr = jax.random.bernoulli(k4, 0.5, (2, 3, 7)).astype(jnp.float32)
    assert jnp.allclose(focal_loss(xr, tr), reference(xr, tr),
                        atol=1e-5, rtol=1e-5)
    nr = jax.block_until_ready(focal_loss(xr, tr, reduction="none"))
    assert nr.shape == (2, 3, 7)
    assert jnp.allclose(nr, reference(xr, tr, reduction="none"),
                        atol=1e-5, rtol=1e-5)

    # Multi-block reduce with the 2-group "parallel" axis (small block budget),
    # plus a ragged multi-block case.
    small = 16 * _LANE * 4                    # 16-row f32 blocks
    xm = jax.random.normal(k1, (64, 128), dtype=jnp.float32)
    tm = jax.random.bernoulli(k2, 0.3, (64, 128)).astype(jnp.float32)
    assert jnp.allclose(focal_loss(xm, tm, block_bytes=small),
                        reference(xm, tm), atol=1e-5, rtol=1e-5)
    xq = jax.random.normal(k3, (67, 128), dtype=jnp.float32)
    tq = jax.random.bernoulli(k4, 0.3, (67, 128)).astype(jnp.float32)
    assert jnp.allclose(focal_loss(xq, tq, reduction="sum", block_bytes=small),
                        reference(xq, tq, reduction="sum"),
                        atol=1e-3, rtol=1e-5)

    # bf16 inputs stream at native width; f32 accumulation inside the kernel.
    xb = x.astype(jnp.bfloat16)
    tb16 = t.astype(jnp.bfloat16)
    assert jnp.allclose(focal_loss(xb, tb16), reference(xb, tb16),
                        atol=1e-4, rtol=1e-4)
    nb = jax.block_until_ready(focal_loss(xb, tb16, reduction="none"))
    assert nb.dtype == jnp.bfloat16 and nb.shape == (B, C)

    # logits=False path (probability inputs).
    p = jax.nn.sigmoid(x)
    assert jnp.allclose(focal_loss(p, t, logits=False),
                        reference(p, t, logits=False), atol=1e-5, rtol=1e-5)

    print("KERNEL_OK")
</pallas_src>

<mosaic_0001>
module attributes {stable_mosaic.version = 11 : i64} {
  func.func @_focal_reduce_kernel(%arg0: i32, %arg1: i32, %arg2: memref<8x128xf32, #tpu.memory_space<vmem>>, %arg3: memref<8x128xf32, #tpu.memory_space<vmem>>, %arg4: memref<8x128xf32, #tpu.memory_space<vmem>>) attributes {dimension_semantics = [#tpu.dimension_semantics<parallel>, #tpu.dimension_semantics<arbitrary>], iteration_bounds = array<i64: 1, 1>, scalar_prefetch = 0 : i64, scratch_operands = 0 : i64, tpu.core_type = #tpu.core_type<tc>, window_params = [{transform_indices = @transform_0, window_bounds = array<i64: 8, 128>}, {transform_indices = @transform_1, window_bounds = array<i64: 8, 128>}, {transform_indices = @transform_2, window_bounds = array<i64: 8, 128>}]} {
    %c0_i32 = arith.constant 0 : i32
    %0 = arith.cmpi eq, %arg1, %c0_i32 : i32
    %1 = arith.extui %0 : i1 to i32
    %c0_i32_0 = arith.constant 0 : i32
    %2 = arith.cmpi ne, %1, %c0_i32_0 : i32
    scf.if %2 {
      %cst_13 = arith.constant 0.000000e+00 : f32
      %32 = vector.broadcast %cst_13 : f32 to vector<8x128xf32>
      %c0_14 = arith.constant 0 : index
      %c0_15 = arith.constant 0 : index
      %33 = vector.load %arg4[%c0_14, %c0_15] : memref<8x128xf32, #tpu.memory_space<vmem>>, vector<8x128xf32>
      tpu.vector_store %arg4[%c0_14, %c0_15], %32 {strides = array<i32>} : memref<8x128xf32, #tpu.memory_space<vmem>>, vector<8x128xf32>,
    } else {
    }
    %c0 = arith.constant 0 : index
    %c0_1 = arith.constant 0 : index
    %3 = vector.load %arg2[%c0, %c0_1] : memref<8x128xf32, #tpu.memory_space<vmem>>, vector<8x128xf32>
    %c0_2 = arith.constant 0 : index
    %c0_3 = arith.constant 0 : index
    %4 = vector.load %arg3[%c0_2, %c0_3] : memref<8x128xf32, #tpu.memory_space<vmem>>, vector<8x128xf32>
    %cst = arith.constant 0.000000e+00 : f32
    %5 = vector.broadcast %cst : f32 to vector<8x128xf32>
    %6 = arith.maximumf %3, %5 : vector<8x128xf32>
    %7 = math.absf %3 : vector<8x128xf32>
    %cst_4 = arith.constant 0.000000e+00 : f32
    %8 = vector.broadcast %cst_4 : f32 to vector<8x128xf32>
    %9 = arith.subf %8, %7 : vector<8x128xf32>
    %10 = math.exp %9 : vector<8x128xf32>
    %11 = arith.mulf %3, %4 : vector<8x128xf32>
    %12 = arith.subf %6, %11 : vector<8x128xf32>
    %13 = math.log1p %10 : vector<8x128xf32>
    %14 = arith.addf %12, %13 : vector<8x128xf32>
    %15 = arith.mulf %3, %4 : vector<8x128xf32>
    %16 = arith.subf %15, %6 : vector<8x128xf32>
    %17 = math.exp %16 : vector<8x128xf32>
    %cst_5 = arith.constant 1.000000e+00 : f32
    %18 = vector.broadcast %cst_5 : f32 to vector<8x128xf32>
    %19 = arith.addf %18, %10 : vector<8x128xf32>
    %20 = arith.divf %17, %19 : vector<8x128xf32>
    %cst_6 = arith.constant 1.000000e+00 : f32
    %21 = vector.broadcast %cst_6 : f32 to vector<8x128xf32>
    %22 = arith.subf %21, %20 : vector<8x128xf32>
    %23 = arith.mulf %22, %22 : vector<8x128xf32>
    %cst_7 = arith.constant 1.000000e+00 : f32
    %24 = vector.broadcast %cst_7 : f32 to vector<8x128xf32>
    %25 = arith.mulf %24, %23 : vector<8x128xf32>
    %26 = arith.mulf %25, %14 : vector<8x128xf32>
    %c0_8 = arith.constant 0 : index
    %c0_9 = arith.constant 0 : index
    %27 = vector.load %arg4[%c0_8, %c0_9] : memref<8x128xf32, #tpu.memory_space<vmem>>, vector<8x128xf32>
    %28 = vector.shape_cast %26 : vector<8x128xf32> to vector<1x8x128xf32>
    %cst_10 = arith.constant dense<0.000000e+00> : vector<8x128xf32>
    %29 = vector.multi_reduction <add>, %28, %cst_10 [0] : vector<1x8x128xf32> to vector<8x128xf32>
    %30 = arith.addf %27, %29 : vector<8x128xf32>
    %c0_11 = arith.constant 0 : index
    %c0_12 = arith.constant 0 : index
    %31 = vector.load %arg4[%c0_11, %c0_12] : memref<8x128xf32, #tpu.memory_space<vmem>>, vector<8x128xf32>
    tpu.vector_store %arg4[%c0_11, %c0_12], %30 {strides = array<i32>} : memref<8x128xf32, #tpu.memory_space<vmem>>, vector<8x128xf32>,
    return
  }
  func.func @transform_0(%arg0: i32, %arg1: i32) -> (i32, i32) {
    %c1_i32 = arith.constant 1 : i32
    %0 = arith.muli %arg0, %c1_i32 : i32
    %1 = arith.addi %0, %arg1 : i32
    %c0_i32 = arith.constant 0 : i32
    %c0_i32_0 = arith.constant 0 : i32
    return %1, %c0_i32 : i32, i32
  }
  func.func @transform_1(%arg0: i32, %arg1: i32) -> (i32, i32) {
    %c1_i32 = arith.constant 1 : i32
    %0 = arith.muli %arg0, %c1_i32 : i32
    %1 = arith.addi %0, %arg1 : i32
    %c0_i32 = arith.constant 0 : i32
    %c0_i32_0 = arith.constant 0 : i32
    return %1, %c0_i32 : i32, i32
  }
  func.func @transform_2(%arg0: i32, %arg1: i32) -> (i32, i32) {
    %c0_i32 = arith.constant 0 : i32
    %c0_i32_0 = arith.constant 0 : i32
    return %arg0, %c0_i32 : i32, i32
  }
}

</mosaic_0001>

<bundles_post_ra>
// kernel: focal_loss.1
= control target key start
LH: loop header
LB: loop body
LE: loop exit
PB: predicated region body
PF: predicated region fallthrough
CT: control target
= control target key end

     0   :  { %7 = vsyncpa [#allocation3], 0  ;;  %s189_s0 = inlined_call_operand.hbm [shape: f32[8,128], index: 0, kind: input, shape index: {}]   ;;  %s190_s1 = inlined_call_operand.hbm [shape: f32[8,128], index: 1, kind: input, shape index: {}]   ;;  %s191_s2 = inlined_call_operand.vmem [shape: f32[8,128], index: 2, kind: output, shape index: {}]  }
   0x1   :  { %8 = vsyncpa [#allocation5], 0  ;;  %s145_s9 = smov [#allocation2]   ;;  %s146_s11 = smov [#allocation4]  }
   0x2   :  { %s18_s10 = sshll.u32 %s145_s9, 4  ;;  %s31_s12 = sshll.u32 %s146_s11, 4  ;;  %s19_s10 = int_to_ptr.vmem [resolvable:$true] %s18_s10  ;;  %s32_s12 = int_to_ptr.vmem [resolvable:$true] %s31_s12 }
   0x3   :  { %s97_s15 = scalar_lea.hbm %s189_s0, 128 }
   0x4   :  { %p98_p0 = scmp.ne.s32.totalorder %s189_s0, %s97_s15  ;;  %p101_p1 = scmp.lt.u32.totalorder %s97_s15, %s189_s0 }
   0x6   :  { %p103_p2 = pnand %p101_p1, %p98_p0 }
   0x8   :  { %106 = shalt.err (!%p103_p2)
}
   0x9   :  { %s107_s20 = scalar_lea.vmem %s19_s10, 128  ;;  %p112_p4 = scmp.lt.s32.totalorder %s19_s10, %s19_s10 }
   0xa   :  { %p108_p3 = scmp.ne.s32.totalorder %s19_s10, %s107_s20  ;;  %p113_p5 = scmp.lt.s32.totalorder %s107_s20, %s107_s20 }
   0xc   :  { %p114_p6 = por %p113_p5, %p112_p4 }
   0xe   :  { %p115_p7 = pnand %p114_p6, %p108_p3 }
  0x10   :  { %118 = shalt.err (!%p115_p7)
}
  0x11   :  { %21 = dma.hbm_to_vmem [thread:$0]  %s189_s0, 128, %s19_s10, [#allocation3]  }
  0x12   :  { %s119_s25 = scalar_lea.hbm %s190_s1, 128 }
  0x13   :  { %p120_p8 = scmp.ne.s32.totalorder %s190_s1, %s119_s25  ;;  %p123_p9 = scmp.lt.u32.totalorder %s119_s25, %s190_s1 }
  0x15   :  { %p125_p10 = pnand %p123_p9, %p120_p8 }
  0x17   :  { %128 = shalt.err (!%p125_p10)
}
  0x18   :  { %s129_s30 = scalar_lea.vmem %s32_s12, 128  ;;  %p134_p12 = scmp.lt.s32.totalorder %s32_s12, %s32_s12 }
  0x19   :  { %p130_p11 = scmp.ne.s32.totalorder %s32_s12, %s129_s30  ;;  %p135_p13 = scmp.lt.s32.totalorder %s129_s30, %s129_s30 }
  0x1b   :  { %p136_p0 = por %p135_p13, %p134_p12 }
  0x1d   :  { %p137_p1 = pnand %p136_p0, %p130_p11 }
  0x1f   :  { %140 = shalt.err (!%p137_p1)
}
  0x20   :  { %34 = dma.hbm_to_vmem [thread:$0]  %s190_s1, 128, %s32_s12, [#allocation5]  }
  0x21   :  { %141 = dma.done.wait [#allocation3], 128  }
  0x22   :  { %142 = vsyncadd [#allocation3], 4294967168 }
  0x23   :  { %143 = dma.done.wait [#allocation5], 128  }
  0x24   :  { %144 = vsyncadd [#allocation5], 4294967168  ;;  %v48_v0 = vld [vmem:[#allocation2] sm:$0xff]  ;;  %v49_v3 = vld [vmem:[#allocation4] sm:$0xff] }
  0x25   :  { %v51_v1 = vand.u32 2147483647, %v48_v0  ;;  %v50_v5 = vmax.f32 %v48_v0, 0.0  ;;  %v55_v6 = vmul.f32 %v49_v3, %v48_v0 }
  0x27   :  { %v52_v2 = vsub.f32 0.0, %v51_v1  ;;  %v67_v7 = vsub.f32 %v55_v6, %v50_v5  ;;  %v56_v17 = vsub.f32 %v50_v5, %v55_v6 }
  0x29   :  { %v53_v4 = vmul.f32 1.442695, %v52_v2  ;;  %v68_v8 = vmul.f32 1.442695, %v67_v7 }
  0x2b   :  { %89 = vpow2.f32 %v53_v4 }
  0x2c   :  { %91 = vpow2.f32 %v68_v8 }
  0x35   :  { %v90_v9 = vpop.eup %89 }
  0x36   :  { %v57_v10 = vadd.f32 1.0, %v90_v9  ;;  %v60_v11 = vmul.f32 -0.5, %v90_v9  ;;  %v63_v13 = vand.u32 2147483647, %v90_v9  ;;  %v92_v14 = vpop.eup %91 }
  0x38   :  { %93 = vlog2.f32 %v57_v10  ;;  %v61_v12 = vadd.f32 1.0, %v60_v11  ;;  %vm64_vm0 = vcmp.lt.f32.partialorder %v63_v13, 0.0004427343 }
  0x39   :  { %95 = vrcp.f32 %v57_v10 }
  0x3a   :  { %v62_v15 = vmul.f32 %v90_v9, %v61_v12 }
  0x42   :  { %v94_v16 = vpop.eup %93 }
  0x43   :  { %v96_v18 = vpop.eup %95  ;;  %v59_v19 = vmul.f32 0.6931472, %v94_v16 }
  0x44   :  { %v72_v20 = vmul.f32 %v96_v18, %v92_v14 }
  0x45   :  { %v65_v21 = vsel %vm64_vm0, %v62_v15, %v59_v19 }
  0x46   :  { %v66_v22 = vadd.f32 %v65_v21, %v56_v17  ;;  %v73_v23 = vsub.f32 1.0, %v72_v20 }
  0x48   :  { %v74_v24 = vmul.f32 %v73_v23, %v73_v23 }
  0x4a   :  { %v75_v25 = vmul.f32 %v74_v24, %v66_v22 }
  0x4c   :  { %79 = vst [vmem:[%s191_s2] sm:$0xff] %v75_v25 }
  0x4d   :  { %84 = vsyncpa [#allocation3], 1 }
  0x4e   :  { %85 = vsyncpa [#allocation5], 1 }

</bundles_post_ra>
